<compile_context>
chip_gen: v7x
topology: tpu7x:2x2x1
jax: 0.10.0
libtpu: 0.0.40
codegen_flags: <defaults>
</compile_context>

<pallas_src>
import math
from typing import NamedTuple, Optional

import jax
import jax.numpy as jnp
from jax.experimental import pallas as pl
from jax.experimental.pallas import tpu as pltpu


def _round_up(x: int, m: int) -> int:
    return ((x + m - 1) // m) * m


class ProjectionParams(NamedTuple):
    """Prepared (load-time) parameters for the projection kernel."""
    weight: jax.Array            # (k_pad, n_pad), (input, output) layout, zero padded
    bias: Optional[jax.Array]    # (1, n_pad) or None
    input_dim: int               # original K
    output_dim: int              # original N
    block_n: int                 # tn used for padding N
    block_k: int                 # tk used for padding K


def prepare_params(weight, bias=None, *, weight_dtype=None,
                   block_n: int = 512, block_k: int = 512) -> ProjectionParams:
    """Convert a PyTorch-convention (output_dim, input_dim) weight into the
    padded (input_dim, output_dim) layout the kernel consumes.

    Call ONCE at parameter-load time (outside the per-step forward) so the
    transpose / padding / optional bf16 cast never run per call.
    """
    n, k = weight.shape
    w = jnp.asarray(weight)
    if weight_dtype is not None:
        w = w.astype(weight_dtype)
    w = w.T                                   # (K, N)

    tk = k if k <= block_k else block_k       # full-K block when small -> no K padding
    tn = _round_up(n, 128) if n <= block_n else block_n
    k_pad = _round_up(k, tk)
    n_pad = _round_up(n, tn)

    if (k_pad, n_pad) != (k, n):
        # Zero padding along K is required for correctness of the accumulator;
        # padding along N just keeps the weight block fully in-bounds.
        w = jnp.pad(w, ((0, k_pad - k), (0, n_pad - n)))
    w = jnp.asarray(w)                        # materialize now, at load time

    b = None
    if bias is not None:
        b = jnp.asarray(bias).reshape(1, n)
        if n_pad != n:
            b = jnp.pad(b, ((0, 0), (0, n_pad - n)))
        b = jnp.asarray(b)

    return ProjectionParams(weight=w, bias=b, input_dim=k, output_dim=n,
                            block_n=tn, block_k=tk)


def _make_linear_kernel(*, has_bias: bool, k_rem: int):
    """Build the matmul kernel.  k_rem != 0 means the last K block of `x`
    reads past the end of the array and must be masked."""

    def _body(x_ref, w_ref, b_ref, o_ref, acc_ref):
        kk = pl.program_id(2)
        last = pl.num_programs(2) - 1

        @pl.when(kk == 0)
        def _():
            acc_ref[...] = jnp.zeros_like(acc_ref)

        x = x_ref[...]
        if k_rem:
            # Ragged K tail: out-of-bounds lanes of the last block hold garbage
            # (possibly NaN) -- zero them so they never reach the accumulator.
            col = jax.lax.broadcasted_iota(jnp.int32, x.shape, 1)
            limit = jnp.where(kk == last, k_rem, x.shape[1]).astype(jnp.int32)
            x = jnp.where(col < limit, x, jnp.zeros_like(x))
        if x.dtype != w_ref.dtype:
            # Explicit opt-in via prepare_params(weight_dtype=...): run the MXU
            # in the weight dtype (e.g. bf16), accumulate in f32.
            x = x.astype(w_ref.dtype)

        acc_ref[...] += jnp.dot(x, w_ref[...], preferred_element_type=jnp.float32)

        @pl.when(kk == last)
        def _():
            r = acc_ref[...]
            if b_ref is not None:
                r = r + b_ref[...].astype(jnp.float32)
            o_ref[...] = r.astype(o_ref.dtype)

    if has_bias:
        def kernel(x_ref, w_ref, b_ref, o_ref, acc_ref):
            _body(x_ref, w_ref, b_ref, o_ref, acc_ref)
    else:
        def kernel(x_ref, w_ref, o_ref, acc_ref):
            _body(x_ref, w_ref, None, o_ref, acc_ref)
    return kernel


def projection_forward(x, params: ProjectionParams, *, tm=None):
    """y = x @ W^T + b with a tiled Pallas TPU matmul kernel.

    x      : (*, input_dim)
    params : result of prepare_params(weight, bias)
    returns: (*, output_dim), dtype of x
    """
    *lead, k = x.shape
    if k != params.input_dim:
        raise ValueError(f"input_dim mismatch: {k} vs {params.input_dim}")

    n = params.output_dim
    w = params.weight
    b = params.bias
    k_pad, n_pad = w.shape
    tn, tk = params.block_n, params.block_k

    out_dtype = x.dtype
    m = math.prod(lead) if lead else 1
    if m == 0:
        return jnp.zeros((*lead, n), out_dtype)

    itemsize = jnp.dtype(x.dtype).itemsize
    sub = max(8, 32 // itemsize)                # sublane granularity per dtype
    if tm is None:
        tm = 512 if itemsize >= 4 else 1024
    tm = min(tm, _round_up(m, sub))

    m_blocks = pl.cdiv(m, tm)
    n_blocks = pl.cdiv(n, tn)
    k_blocks = k_pad // tk

    # Keep both TensorCores of a megacore part busy if the grid would collapse
    # to only the (serial) K axis.
    if m_blocks == 1 and n_blocks == 1 and m >= 256:
        tm = _round_up((m + 1) // 2, sub)
        m_blocks = pl.cdiv(m, tm)

    x2 = x.reshape(m, k)

    has_bias = b is not None
    kernel = _make_linear_kernel(has_bias=has_bias, k_rem=k % tk)

    # VMEM budget: double-buffered x / w / out tiles + f32 accumulator (+ bias),
    # plus fixed headroom, capped generation-aware (~half of physical VMEM).
    w_itemsize = jnp.dtype(w.dtype).itemsize
    tile_bytes = (
        2 * tm * tk * itemsize
        + 2 * tk * tn * w_itemsize
        + 2 * tm * tn * itemsize
        + tm * tn * 4
        + (2 * tn * jnp.dtype(b.dtype).itemsize if has_bias else 0)
    )
    try:
        vmem_cap = int(pltpu.get_tpu_info().vmem_capacity_bytes)
    except Exception:
        vmem_cap = 64 * 1024 * 1024             # conservative (v7x per-core)
    vmem_limit = int(min(max(tile_bytes + 8 * 1024 * 1024, 16 * 1024 * 1024),
                         vmem_cap // 2))

    cost = pl.CostEstimate(
        flops=2 * (m_blocks * tm) * (n_blocks * tn) * k_pad,
        bytes_accessed=(
            m * k * itemsize * n_blocks            # x streamed once per N block
            + k_pad * n_pad * w_itemsize * m_blocks  # weight streamed once per M block
            + m * n * jnp.dtype(out_dtype).itemsize  # output written once
            + (n_pad * jnp.dtype(b.dtype).itemsize * m_blocks if has_bias else 0)
        ),
        transcendentals=0,
    )

    in_specs = [
        pl.BlockSpec((tm, tk), lambda i, j, kk: (i, kk)),   # x tile
        pl.BlockSpec((tk, tn), lambda i, j, kk: (kk, j)),   # weight tile
    ]
    args = [x2, w]
    if has_bias:
        in_specs.append(pl.BlockSpec((1, tn), lambda i, j, kk: (0, j)))
        args.append(b)

    out = pl.pallas_call(
        kernel,
        out_shape=jax.ShapeDtypeStruct((m, n), out_dtype),
        grid=(m_blocks, n_blocks, k_blocks),
        in_specs=in_specs,
        out_specs=pl.BlockSpec((tm, tn), lambda i, j, kk: (i, j)),
        scratch_shapes=[pltpu.VMEM((tm, tn), jnp.float32)],
        compiler_params=pltpu.CompilerParams(
            dimension_semantics=("parallel", "parallel", "arbitrary"),
            vmem_limit_bytes=vmem_limit,
        ),
        cost_estimate=cost,
    )(*args)

    return out.reshape(*lead, n)


if __name__ == "__main__":
    # Small, fairseq2-style shapes: (batch, seq, input_dim) -> (batch, seq, output_dim)
    batch, seq = 2, 8
    input_dim, output_dim = 32, 64

    key = jax.random.PRNGKey(0)
    kx, kw, kb, kx2, kw2, kb2 = jax.random.split(key, 6)

    # Deterministic parameter init (nn.Linear-style uniform bounds).
    bound = 1.0 / math.sqrt(input_dim)
    weight = jax.random.uniform(
        kw, (output_dim, input_dim), jnp.float32, minval=-bound, maxval=bound
    )
    bias = jax.random.uniform(
        kb, (output_dim,), jnp.float32, minval=-bound, maxval=bound
    )
    x = jax.random.normal(kx, (batch, seq, input_dim), jnp.float32)

    # One-time parameter preparation (transpose / pad happen here, not per call).
    params = prepare_params(weight, bias)
    y = jax.block_until_ready(projection_forward(x, params))
    y_ref = x @ weight.T + bias
    assert y.shape == (batch, seq, output_dim)
    assert jnp.allclose(y, y_ref, atol=1e-5, rtol=1e-5), "mismatch (bias path)"

    # No-bias variant (separate kernel, no zero-bias streaming).
    params_nb = prepare_params(weight)
    y_nb = jax.block_until_ready(projection_forward(x, params_nb))
    assert jnp.allclose(y_nb, x @ weight.T, atol=1e-5, rtol=1e-5), "mismatch (no-bias path)"

    # Ragged M and multi-step ragged K (exercises the in-kernel K-tail mask).
    in2, out2 = 600, 96
    bound2 = 1.0 / math.sqrt(in2)
    w_big = jax.random.uniform(
        kw2, (out2, in2), jnp.float32, minval=-bound2, maxval=bound2
    )
    b_big = jax.random.uniform(kb2, (out2,), jnp.float32, minval=-bound2, maxval=bound2)
    x_big = jax.random.normal(kx2, (3, 5, in2), jnp.float32)
    params_big = prepare_params(w_big, b_big)
    y_big = jax.block_until_ready(projection_forward(x_big, params_big))
    y_big_ref = x_big @ w_big.T + b_big
    assert jnp.allclose(y_big, y_big_ref, atol=1e-3, rtol=1e-3), "mismatch (ragged path)"

    # Optional bf16-weight fast path (explicit opt-in; f32 accumulation).
    params_bf16 = prepare_params(weight, bias, weight_dtype=jnp.bfloat16)
    y_bf16 = jax.block_until_ready(projection_forward(x, params_bf16))
    assert jnp.allclose(y_bf16, y_ref, atol=5e-2, rtol=5e-2), "mismatch (bf16 weights)"

    print("KERNEL_OK")
</pallas_src>

<mosaic_0001>
module attributes {stable_mosaic.version = 11 : i64} {
  func.func @kernel(%arg0: i32, %arg1: i32, %arg2: i32, %arg3: memref<16x32xf32, #tpu.memory_space<vmem>>, %arg4: memref<32x128xf32, #tpu.memory_space<vmem>>, %arg5: memref<1x128xf32, #tpu.memory_space<vmem>>, %arg6: memref<16x128xf32, #tpu.memory_space<vmem>>, %arg7: memref<16x128xf32, #tpu.memory_space<vmem>>) attributes {dimension_semantics = [#tpu.dimension_semantics<parallel>, #tpu.dimension_semantics<parallel>, #tpu.dimension_semantics<arbitrary>], iteration_bounds = array<i64: 1, 1, 1>, scalar_prefetch = 0 : i64, scratch_operands = 1 : i64, tpu.core_type = #tpu.core_type<tc>, window_params = [{transform_indices = @transform_0, window_bounds = array<i64: 16, 32>}, {transform_indices = @transform_1, window_bounds = array<i64: 32, 128>}, {transform_indices = @transform_2, window_bounds = array<i64: 1, 128>}, {transform_indices = @transform_3, window_bounds = array<i64: 16, 128>}]} {
    %c0_i32 = arith.constant 0 : i32
    %0 = arith.cmpi eq, %arg2, %c0_i32 : i32
    %1 = arith.extui %0 : i1 to i32
    %c0_i32_0 = arith.constant 0 : i32
    %2 = arith.cmpi ne, %1, %c0_i32_0 : i32
    scf.if %2 {
      %cst_10 = arith.constant 0.000000e+00 : f32
      %12 = vector.broadcast %cst_10 : f32 to vector<16x128xf32>
      %c0_11 = arith.constant 0 : index
      %c0_12 = arith.constant 0 : index
      %13 = vector.load %arg7[%c0_11, %c0_12] : memref<16x128xf32, #tpu.memory_space<vmem>>, vector<16x128xf32>
      tpu.vector_store %arg7[%c0_11, %c0_12], %12 {strides = array<i32>} : memref<16x128xf32, #tpu.memory_space<vmem>>, vector<16x128xf32>,
    } else {
    }
    %c0 = arith.constant 0 : index
    %c0_1 = arith.constant 0 : index
    %3 = vector.load %arg3[%c0, %c0_1] : memref<16x32xf32, #tpu.memory_space<vmem>>, vector<16x32xf32>
    %c0_2 = arith.constant 0 : index
    %c0_3 = arith.constant 0 : index
    %4 = vector.load %arg7[%c0_2, %c0_3] : memref<16x128xf32, #tpu.memory_space<vmem>>, vector<16x128xf32>
    %c0_4 = arith.constant 0 : index
    %c0_5 = arith.constant 0 : index
    %5 = vector.load %arg4[%c0_4, %c0_5] : memref<32x128xf32, #tpu.memory_space<vmem>>, vector<32x128xf32>
    %cst = arith.constant dense<0.000000e+00> : vector<16x128xf32>
    %6 = tpu.matmul %3, %5, %cst {dimension_numbers = #tpu.dot_dimension_numbers<[1], [0], [0], [1], [0, 0, 1, 1], [], []>} : vector<16x32xf32>, vector<32x128xf32>, vector<16x128xf32> -> vector<16x128xf32>
    %7 = arith.addf %4, %6 : vector<16x128xf32>
    %c0_6 = arith.constant 0 : index
    %c0_7 = arith.constant 0 : index
    %8 = vector.load %arg7[%c0_6, %c0_7] : memref<16x128xf32, #tpu.memory_space<vmem>>, vector<16x128xf32>
    tpu.vector_store %arg7[%c0_6, %c0_7], %7 {strides = array<i32>} : memref<16x128xf32, #tpu.memory_space<vmem>>, vector<16x128xf32>,
    %c0_i32_8 = arith.constant 0 : i32
    %9 = arith.cmpi eq, %arg2, %c0_i32_8 : i32
    %10 = arith.extui %9 : i1 to i32
    %c0_i32_9 = arith.constant 0 : i32
    %11 = arith.cmpi ne, %10, %c0_i32_9 : i32
    scf.if %11 {
      %c0_10 = arith.constant 0 : index
      %c0_11 = arith.constant 0 : index
      %12 = vector.load %arg7[%c0_10, %c0_11] : memref<16x128xf32, #tpu.memory_space<vmem>>, vector<16x128xf32>
      %c0_12 = arith.constant 0 : index
      %c0_13 = arith.constant 0 : index
      %13 = vector.load %arg5[%c0_12, %c0_13] : memref<1x128xf32, #tpu.memory_space<vmem>>, vector<1x128xf32>
      %14 = vector.broadcast %13 : vector<1x128xf32> to vector<16x128xf32>
      %15 = arith.addf %12, %14 : vector<16x128xf32>
      %c0_14 = arith.constant 0 : index
      %c0_15 = arith.constant 0 : index
      %16 = vector.load %arg6[%c0_14, %c0_15] : memref<16x128xf32, #tpu.memory_space<vmem>>, vector<16x128xf32>
      tpu.vector_store %arg6[%c0_14, %c0_15], %15 {strides = array<i32>} : memref<16x128xf32, #tpu.memory_space<vmem>>, vector<16x128xf32>,
    } else {
    }
    return
  }
  func.func @transform_0(%arg0: i32, %arg1: i32, %arg2: i32) -> (i32, i32) {
    %c0_i32 = arith.constant 0 : i32
    return %arg0, %arg2 : i32, i32
  }
  func.func @transform_1(%arg0: i32, %arg1: i32, %arg2: i32) -> (i32, i32) {
    %c0_i32 = arith.constant 0 : i32
    return %arg2, %arg1 : i32, i32
  }
  func.func @transform_2(%arg0: i32, %arg1: i32, %arg2: i32) -> (i32, i32) {
    %c0_i32 = arith.constant 0 : i32
    %c0_i32_0 = arith.constant 0 : i32
    return %c0_i32, %arg1 : i32, i32
  }
  func.func @transform_3(%arg0: i32, %arg1: i32, %arg2: i32) -> (i32, i32) {
    %c0_i32 = arith.constant 0 : i32
    return %arg0, %arg1 : i32, i32
  }
}

</mosaic_0001>

<bundles_post_ra>
// kernel: tpu_custom_call.1
= control target key start
LH: loop header
LB: loop body
LE: loop exit
PB: predicated region body
PF: predicated region fallthrough
CT: control target
= control target key end

     0   :  { %8 = vsyncpa [#allocation4], 0  ;;  %s355_s0 = inlined_call_operand.hbm [shape: f32[16,32], index: 0, kind: input, shape index: {}]   ;;  %s356_s1 = inlined_call_operand.hbm [shape: f32[32,128], index: 1, kind: input, shape index: {}]   ;;  %s357_s2 = inlined_call_operand.vmem [shape: f32[1,128], index: 2, kind: input, shape index: {}]   ;;  %s358_s3 = inlined_call_operand.hbm [shape: f32[16,64], index: 3, kind: output, shape index: {}]  }
   0x1   :  { %9 = vsyncpa [#allocation7], 0 }
   0x2   :  { %10 = vsyncpa [#allocation5], 0  ;;  %s282_s12 = smov [#allocation3]   ;;  %s210_s16 = scalar_lea.hbm %s355_s0, 256 }
   0x3   :  { %s16_s13 = sshll.u32 %s282_s12, 4  ;;  %p211_p0 = scmp.ne.s32.totalorder %s355_s0, %s210_s16  ;;  %s17_s13 = int_to_ptr.vmem [resolvable:$true] %s16_s13 }
   0x4   :  { %p214_p1 = scmp.lt.u32.totalorder %s210_s16, %s355_s0 }
   0x6   :  { %p216_p2 = pnand %p214_p1, %p211_p0 }
   0x8   :  { %219 = shalt.err (!%p216_p2)
}
   0x9   :  { %s220_s21 = scalar_lea.vmem %s17_s13, 256  ;;  %p225_p4 = scmp.lt.s32.totalorder %s17_s13, %s17_s13 }
   0xa   :  { %p221_p3 = scmp.ne.s32.totalorder %s17_s13, %s220_s21  ;;  %p226_p5 = scmp.lt.s32.totalorder %s220_s21, %s220_s21 }
   0xc   :  { %p227_p6 = por %p226_p5, %p225_p4 }
   0xe   :  { %p228_p7 = pnand %p227_p6, %p221_p3 }
  0x10   :  { %231 = shalt.err (!%p228_p7)
}
  0x11   :  { %s283_s22 = smov 128   ;;  %s284_s23 = smov 8  }
  0x12   :  { %22 = dma.hbm_to_vmem [thread:$0]  %s355_s0, 256, %s17_s13, [#allocation4], %s283_s22, %s283_s22, %s284_s23  }
  0x13   :  { %s285_s26 = smov [#allocation6]   ;;  %s232_s30 = scalar_lea.hbm %s356_s1, 512 }
  0x14   :  { %s28_s27 = sshll.u32 %s285_s26, 4  ;;  %p233_p8 = scmp.ne.s32.totalorder %s356_s1, %s232_s30  ;;  %s29_s27 = int_to_ptr.vmem [resolvable:$true] %s28_s27 }
  0x15   :  { %p236_p9 = scmp.lt.u32.totalorder %s232_s30, %s356_s1 }
  0x17   :  { %p238_p10 = pnand %p236_p9, %p233_p8 }
  0x19   :  { %241 = shalt.err (!%p238_p10)
}
  0x1a   :  { %s242_s8 = scalar_lea.vmem %s29_s27, 512  ;;  %p247_p12 = scmp.lt.s32.totalorder %s29_s27, %s29_s27 }
  0x1b   :  { %p243_p11 = scmp.ne.s32.totalorder %s29_s27, %s242_s8  ;;  %p248_p13 = scmp.lt.s32.totalorder %s242_s8, %s242_s8 }
  0x1d   :  { %p249_p0 = por %p248_p13, %p247_p12 }
  0x1f   :  { %p250_p1 = pnand %p249_p0, %p243_p11 }
  0x21   :  { %253 = shalt.err (!%p250_p1)
}
  0x22   :  { %34 = dma.hbm_to_vmem [thread:$0]  %s356_s1, 512, %s29_s27, [#allocation7], %s283_s22, %s283_s22, %s284_s23  }
  0x23   :  { %276 = dma.done.wait [#allocation4], 256  }
  0x24   :  { %277 = vsyncadd [#allocation4], 4294967040 }
  0x25   :  { %278 = dma.done.wait [#allocation7], 512  }
  0x26   :  { %279 = vsyncadd [#allocation7], 4294966784  ;;  %vm57_vm0 = vcmask 261120   ;;  %v53_v0 = vld [vmem:[#allocation6] sm:$0xff]  ;;  %v54_v1 = vld [vmem:[#allocation6 + $0x8] sm:$0xff]  ;;  %s286_s11 = smov [#allocation8]  }
  0x27   :  { %v55_v2 = vld [vmem:[#allocation6 + $0x10] sm:$0xff]  ;;  %v197_v3 = vpack.c.bf16 %v54_v1, %v53_v0  ;;  %v56_v4 = vld [vmem:[#allocation6 + $0x18] sm:$0xff]  ;;  %s164_s12 = sshll.u32 %s286_s11, 4  ;;  %s165_s12 = int_to_ptr.vmem [resolvable:$true] %s164_s12 }
  0x28   :  { %v49_v5 = vld [vmem:[#allocation3] sm:$0xff]  ;;  %v201_v6 = vpack.c.bf16 %v56_v4, %v55_v2  ;;  %v50_v7 = vld [vmem:[#allocation3 + $0x8] sm:$0xff]  ;;  %s254_s13 = scalar_lea.vmem %s165_s12, 256  ;;  %p259_p3 = scmp.lt.s32.totalorder %s165_s12, %s165_s12 }
  0x29   :  { %194 = vmatprep.mubr.msk.f32.mxu0 %vm57_vm0, %v49_v5  ;;  %198 = vmatprep.subr.bf16.mxu0 %v197_v3  ;;  %v179_v8 = vld [vmem:[%s357_s2] ss:$0 sm:$0xff]  ;;  %p255_p2 = scmp.ne.s32.totalorder %s165_s12, %s254_s13  ;;  %p260_p4 = scmp.lt.s32.totalorder %s254_s13, %s254_s13 }
  0x2a   :  { %200 = vmatpush3.bf16.msra.mxu0 %v197_v3 }
  0x2b   :  { %202 = vmatprep.subr.bf16.mxu0 %v201_v6  ;;  %p261_p5 = por %p260_p4, %p259_p3 }
  0x2d   :  { %p262_p6 = pnand %p261_p5, %p255_p2 }
  0x2e   :  { %204 = vmatpush3.bf16.msra.mxu0 %v201_v6 }
  0x31   :  { %195 = vmatmul.mubr.msk.f32.vlgmr.msra.gmra.mrb[0].mxu0 %vm57_vm0, %v50_v7 }
 0x104   :  { %v196_v9 = vpop.f32.mrb[0].mxu0 }
 0x105   :  { %v156_v10 = vadd.f32 %v196_v9, %v179_v8  ;;  %v130_v11 = vpop.f32.mrb[1].mxu0 }
 0x106   :  { %v155_v12 = vadd.f32 %v179_v8, %v130_v11 }
 0x107   :  { %158 = vst [vmem:[#allocation8 + $0x8] sm:$0xff] %v156_v10 }
 0x108   :  { %157 = vst [vmem:[#allocation8] sm:$0xff] %v155_v12 }
 0x109   :  { %265 = shalt.err (!%p262_p6)
}
 0x10a   :  { %s266_s2 = scalar_lea.hbm %s358_s3, 256 }
 0x10b   :  { %p267_p7 = scmp.ne.s32.totalorder %s358_s3, %s266_s2  ;;  %p270_p8 = scmp.lt.u32.totalorder %s266_s2, %s358_s3 }
 0x10d   :  { %p272_p9 = pnand %p270_p8, %p267_p7 }
 0x10f   :  { %275 = shalt.err (!%p272_p9)
}
 0x110   :  { %170 = dma.vmem_to_hbm [thread:$0]  %s165_s12, 256, %s358_s3, [#allocation5], %s283_s22, %s283_s22, %s284_s23  }
 0x111   :  { %280 = dma.done.wait [#allocation5], 256  }
 0x112   :  { %281 = vsyncadd [#allocation5], 4294967040 }
 0x113   :  { %174 = vsyncpa [#allocation4], 1 }
 0x114   :  { %175 = vsyncpa [#allocation7], 1 }
 0x115   :  { %176 = vsyncpa [#allocation5], 1 }

</bundles_post_ra>
